<compile_context>
chip_gen: v7x
topology: tpu7x:2x2x1
jax: 0.10.0
libtpu: 0.0.40
codegen_flags: <defaults>
</compile_context>

<pallas_src>
import jax
import jax.numpy as jnp
from jax.experimental import pallas as pl
from jax.experimental.pallas import tpu as pltpu

_LANES = 128
_MAX_BLOCK_LANES = 64 * 1024      # (8, 64K) f32 block = 2 MiB


# ---------------------------------------------------------------------------
# Kernel
# ---------------------------------------------------------------------------
def _hybrid_ode_kernel(p_ref,                 # SMEM (4,) = [k1, q, 1/K1, b3]
                       y_ref,                 # VMEM (8, tb)  [species;1] x batch
                       big_ref,               # (16+H1, 8) = [A_sel|A_off ; B_lin|B_off ; W1ᵀ|b1]
                       w2_ref, b2_ref,        # (H2, H1), (H2, 1)
                       w3_ref,                # (1, H2)
                       m_ref,                 # (8, 8)  coefficient mixing matrix
                       c_ref,                 # (8, 3)  columns: [c_r1, c_nn, c_const]
                       o_ref):                # VMEM (8, tb)
    hp = jax.lax.Precision.HIGHEST

    k1 = p_ref[0]
    q = p_ref[1]
    inv_K1 = p_ref[2]
    b3 = p_ref[3]

    y = y_ref[...]                             # (8, tb), row 7 == 1.0
    s6 = y[6:7, :]                             # (1, tb)

    # One fused MXU pass: mechanistic product operands + first MLP layer
    # (b1 and the N/A offsets are folded in via the ones row of y).
    g = jnp.dot(big_ref[...], y, precision=hp,
                preferred_element_type=jnp.float32)        # (16+H1, tb)
    prod = g[0:8, :] * g[8:16, :]                           # (8, tb):
    #   [S1*S6, S2*(N-S5), S3*(A-S6), S4*S5, S2*S5, S4-S7, S7, 0]

    # r1 = k1*S1*S6 / (1 + (S6/K1)**q): thin (1, tb) EUP path, single recip.
    # exp(q*log(x)) matches torch's float-exponent pow for x>0 / x==0 / x<0.
    denom = 1.0 + jnp.exp(q * jnp.log(s6 * inv_K1))
    r1 = (k1 * prod[0:1, :]) * pl.reciprocal(denom)         # exact recip (tolerance)

    # MLP: tanh(W1 y + b1) is already in g[16:]; two more small matmuls.
    h = jnp.tanh(g[16:, :])                                  # (H1, tb)
    h = jnp.tanh(jnp.dot(w2_ref[...], h, precision=hp,
                         preferred_element_type=jnp.float32) + b2_ref[...])
    nn = jnp.dot(w3_ref[...], h, precision=hp,
                 preferred_element_type=jnp.float32) + b3    # (1, tb)
    nn = nn + 0.0 * s6                                       # torch 0.0*S6 NaN/Inf parity

    # Mechanistic mixing on the MXU, then rank-1 corrections for r1 / nn / J0.
    c = c_ref[...]                                           # (8, 3)
    ds = jnp.dot(m_ref[...], prod, precision=hp,
                 preferred_element_type=jnp.float32)          # (8, tb)
    ds = ds + c[:, 0:1] * r1 + c[:, 1:2] * nn + c[:, 2:3]
    o_ref[...] = ds                                           # single dense store


# ---------------------------------------------------------------------------
# Tiling / layout helpers
# ---------------------------------------------------------------------------
def _pick_tiles(batch):
    """Return (Bp, tb): lane-padded batch and block width (multiples of 128).

    Blocks are sized up to ~2 MiB so the per-grid-step overhead is amortized;
    for anything beyond one block the grid length is kept >= 2 and even so
    ("parallel",) can shard blocks across both v7x TensorCores; the cap keeps
    double-buffered blocks far under every chip's VMEM budget.
    """
    bp = -(-batch // _LANES) * _LANES
    if bp <= 2 * _LANES:
        return bp, bp                      # one small block; splitting is pure overhead
    n_blocks = max(2, -(-bp // _MAX_BLOCK_LANES))
    if n_blocks % 2:
        n_blocks += 1                      # even block count -> both TCs get work
    tb = -(-bp // (n_blocks * _LANES)) * _LANES
    return tb * n_blocks, tb


def pack_state(y):
    """(B,1,7) torch-layout state -> ((8, Bp) lane-dense slab, B, block_lanes).

    Row 7 == 1.0 (bias row); padded lanes are 1.0 so the log/exp pow path
    stays finite.  Keep the state in this layout across RK stages and call
    hybrid_ode_deriv_dense to avoid per-call transpose/pad HBM passes.
    """
    y2 = jnp.asarray(y, jnp.float32).reshape(-1, 7)
    B = y2.shape[0]
    Bp, tb = _pick_tiles(B)
    y8 = jnp.full((8, Bp), 1.0, jnp.float32)
    y8 = y8.at[:7, :B].set(y2.T)
    return y8, B, tb


def unpack_deriv(dy8, batch):
    """(8, Bp) lane-dense derivative -> (B, 1, 7) torch-layout derivative."""
    return dy8[:7, :batch].T.reshape(-1, 1, 7)


def prepare_constants(params, weights):
    """Fold ODE params / weights into the kernel's constant operands (tiny)."""
    p = jnp.asarray(params, jnp.float32).reshape(-1)
    J0, k1, k2, k3, k4, _k5, k6, k, kappa, q, K1, psi, N, A = [p[i] for i in range(14)]
    w1, b1, w2, b2, w3, b3 = weights
    w1 = jnp.asarray(w1, jnp.float32)                 # (7, H1)
    w2 = jnp.asarray(w2, jnp.float32)                 # (H1, H2)
    w3 = jnp.asarray(w3, jnp.float32)                 # (H2, 1)
    H1, H2 = w1.shape[1], w2.shape[1]
    b1c = jnp.asarray(b1, jnp.float32).reshape(H1, 1)
    b2c = jnp.asarray(b2, jnp.float32).reshape(H2, 1)
    b3s = jnp.asarray(b3, jnp.float32).reshape(())

    # y8 row order: 0:S1 1:S2 2:S3 3:S4 4:S5 5:S7 6:S6 7:ones
    # Product terms P_i = A_i * B_i:
    #   P0=S1*S6  P1=S2*(N-S5)  P2=S3*(A-S6)  P3=S4*S5  P4=S2*S5  P5=S4-S7  P6=S7  P7=0
    a_blk = jnp.zeros((8, 8), jnp.float32)
    a_blk = a_blk.at[0, 0].set(1.0)                   # S1
    a_blk = a_blk.at[1, 1].set(1.0)                   # S2
    a_blk = a_blk.at[2, 2].set(1.0)                   # S3
    a_blk = a_blk.at[3, 3].set(1.0)                   # S4
    a_blk = a_blk.at[4, 1].set(1.0)                   # S2
    a_blk = a_blk.at[5, 7].set(1.0)                   # 1
    a_blk = a_blk.at[6, 7].set(1.0)                   # 1

    b_blk = jnp.zeros((8, 8), jnp.float32)
    b_blk = b_blk.at[0, 6].set(1.0)                                   # S6
    b_blk = b_blk.at[1, 4].set(-1.0).at[1, 7].set(N)                  # N - S5
    b_blk = b_blk.at[2, 6].set(-1.0).at[2, 7].set(A)                  # A - S6
    b_blk = b_blk.at[3, 4].set(1.0)                                   # S5
    b_blk = b_blk.at[4, 4].set(1.0)                                   # S5
    b_blk = b_blk.at[5, 3].set(1.0).at[5, 5].set(-1.0)                # S4 - S7
    b_blk = b_blk.at[6, 5].set(1.0)                                   # S7

    w1_blk = jnp.concatenate([w1.T, b1c], axis=1)                     # (H1, 8)
    big = jnp.concatenate([a_blk, b_blk, w1_blk], axis=0)             # (16+H1, 8)

    # Output row order = [dS1, dS2, dS3, dS4, dS5, dS7, dS6, 0]
    m = jnp.zeros((8, 8), jnp.float32)
    m = m.at[1, 1].set(-k2).at[1, 4].set(-k6)                         # dS2: -t2 - t6
    m = m.at[2, 1].set(k2).at[2, 2].set(-k3)                          # dS3:  t2 - t3
    m = m.at[3, 2].set(k3).at[3, 3].set(-k4).at[3, 5].set(-kappa)     # dS4:  t3 - t4 - tk
    m = m.at[4, 1].set(k2).at[4, 3].set(-k4).at[4, 4].set(-k6)        # dS5:  t2 - t4 - t6
    m = m.at[5, 5].set(psi * kappa).at[5, 6].set(-k)                  # dS7:  psi*tk - k*S7

    c = jnp.zeros((8, 3), jnp.float32)
    c = c.at[0, 0].set(-1.0).at[1, 0].set(2.0)        # r1 column: dS1 -= r1, dS2 += 2 r1
    c = c.at[6, 1].set(1.0)                           # nn column: dS6 row gets the MLP output
    c = c.at[0, 2].set(J0)                            # const column: dS1 += J0

    p_all = jnp.stack([k1, q, 1.0 / K1, b3s])         # (4,) SMEM scalars (1/K1 precomputed)
    return p_all, big, w2.T, b2c, w3.T, m, c


# ---------------------------------------------------------------------------
# pallas_call wrappers
# ---------------------------------------------------------------------------
def hybrid_ode_deriv_dense(y8, params, weights, *, block_lanes=None, consts=None):
    """Derivative in the persistent lane-dense layout: (8, Bp) -> (8, Bp).

    Row 7 of the result is 0, so `y8 + h * dy8` keeps the bias row at 1.0.
    Pass `consts=prepare_constants(...)` when calling inside an RK loop.
    """
    S, Bp = y8.shape
    assert S == 8 and Bp % _LANES == 0
    if block_lanes is None:
        _, block_lanes = _pick_tiles(Bp)
    tb = block_lanes
    assert Bp % tb == 0 and tb % _LANES == 0
    if consts is None:
        consts = prepare_constants(params, weights)
    p_all, big, w2t, b2c, w3t, m_mat, c_mat = consts
    R = big.shape[0]
    H2, H1 = w2t.shape
    n_blocks = Bp // tb

    cost = pl.CostEstimate(
        flops=int(Bp) * (2 * (R * 8 + H2 * H1 + H2 + 8 * 8) + 48),
        transcendentals=int(Bp) * (H1 + H2 + 2),
        bytes_accessed=int(Bp) * 8 * 4 * 2)

    return pl.pallas_call(
        _hybrid_ode_kernel,
        out_shape=jax.ShapeDtypeStruct((8, Bp), jnp.float32),
        grid_spec=pltpu.PrefetchScalarGridSpec(
            num_scalar_prefetch=1,                   # [k1, q, 1/K1, b3] -> SMEM
            grid=(n_blocks,),
            in_specs=[
                pl.BlockSpec((8, tb), lambda i, p: (0, i)),
                pl.BlockSpec((R, 8), lambda i, p: (0, 0)),
                pl.BlockSpec((H2, H1), lambda i, p: (0, 0)),
                pl.BlockSpec((H2, 1), lambda i, p: (0, 0)),
                pl.BlockSpec((1, H2), lambda i, p: (0, 0)),
                pl.BlockSpec((8, 8), lambda i, p: (0, 0)),
                pl.BlockSpec((8, 3), lambda i, p: (0, 0)),
            ],
            out_specs=pl.BlockSpec((8, tb), lambda i, p: (0, i)),
        ),
        compiler_params=pltpu.CompilerParams(
            dimension_semantics=("parallel",),        # shard blocks over v7x TCs
            vmem_limit_bytes=32 * 1024 * 1024),       # explicit budget (v7x: 64 MiB phys)
        cost_estimate=cost,
    )(p_all, y8, big, w2t, b2c, w3t, m_mat, c_mat)


def hybrid_ode_forward(t, y, params, weights):
    """Pallas equivalent of Known_Params_HybridODE.forward(t, y): (B,1,7)->(B,1,7)."""
    del t  # unused, as in the PyTorch module
    y8, B, tb = pack_state(y)
    dy8 = hybrid_ode_deriv_dense(y8, params, weights, block_lanes=tb)
    return unpack_deriv(dy8, B)


# ---------------------------------------------------------------------------
# Pure-JAX reference (mirrors the PyTorch forward)
# ---------------------------------------------------------------------------
def _reference_forward(y, params, weights):
    w1, b1, w2, b2, w3, b3 = weights
    hp = jax.lax.Precision.HIGHEST
    y2 = jnp.asarray(y, jnp.float32).reshape(-1, 7)
    S1, S2, S3, S4, S5, S7, S6 = [y2[:, i] for i in range(7)]
    (J0, k1, k2, k3, k4, _k5, k6, k, kappa, q, K1, psi, N, A) = [
        params[i] for i in range(14)]
    denom = 1.0 + (S6 / K1) ** q
    dS1 = J0 - k1 * S1 * S6 / denom
    dS2 = 2.0 * (k1 * S1 * S6) / denom - k2 * S2 * (N - S5) - k6 * S2 * S5
    dS3 = k2 * S2 * (N - S5) - k3 * S3 * (A - S6)
    dS4 = k3 * S3 * (A - S6) - k4 * S4 * S5 - kappa * (S4 - S7)
    dS5 = k2 * S2 * (N - S5) - k4 * S4 * S5 - k6 * S2 * S5
    dS6 = 0.0 * S6
    dS7 = psi * kappa * (S4 - S7) - k * S7
    h = jnp.tanh(jnp.matmul(y.reshape(-1, 1, 7), w1, precision=hp) + b1)
    h = jnp.tanh(jnp.matmul(h, w2, precision=hp) + b2)
    nn_out = jnp.matmul(h, w3, precision=hp) + b3                 # (B, 1, 1)
    filler = jnp.zeros((nn_out.shape[0], 1, 6), jnp.float32)
    net_out = jnp.concatenate([filler, nn_out], axis=2)           # (B, 1, 7)
    mech = jnp.stack([dS1, dS2, dS3, dS4, dS5, dS7, dS6],
                     axis=1).reshape(-1, 1, 7)
    return mech + net_out


if __name__ == "__main__":
    # ODE parameters [J0, k1, k2, k3, k4, k5, k6, k, kappa, q, K1, psi, N, A]
    params = jnp.array(
        [2.5, 100.0, 6.0, 16.0, 100.0, 1.28, 12.0, 1.8, 13.0, 4.0, 0.52, 0.1,
         1.0, 4.0], dtype=jnp.float32)

    # structure = (7, 1, [32, 32]): Linear(7,32)-Tanh-Linear(32,32)-Tanh-Linear(32,1)
    H1, H2 = 32, 32
    key = jax.random.PRNGKey(0)
    k_y, k_w1, k_w2, k_w3, k_y2 = jax.random.split(key, 5)
    w1 = 0.1 * jax.random.normal(k_w1, (7, H1), dtype=jnp.float32)   # (in, out)
    b1 = jnp.zeros((1, H1), dtype=jnp.float32)
    w2 = 0.1 * jax.random.normal(k_w2, (H1, H2), dtype=jnp.float32)
    b2 = jnp.zeros((1, H2), dtype=jnp.float32)
    w3 = 0.1 * jax.random.normal(k_w3, (H2, 1), dtype=jnp.float32)
    b3 = jnp.zeros((1, 1), dtype=jnp.float32)
    weights = (w1, b1, w2, b2, w3, b3)
    t = jnp.float32(0.0)

    # Small batch (single 128-lane block).
    B = 8
    y = jax.random.uniform(k_y, (B, 1, 7), jnp.float32, minval=0.1, maxval=2.0)
    out = jax.block_until_ready(hybrid_ode_forward(t, y, params, weights))
    ref = _reference_forward(y, params, weights)
    assert out.shape == (B, 1, 7)
    assert jnp.allclose(out, ref, rtol=1e-4, atol=1e-3), \
        float(jnp.max(jnp.abs(out - ref)))

    # Larger batch exercising the multi-block ("parallel") grid + lane padding.
    B2 = 260
    y_big = jax.random.uniform(k_y2, (B2, 1, 7), jnp.float32,
                               minval=0.1, maxval=2.0)
    out2 = jax.block_until_ready(hybrid_ode_forward(t, y_big, params, weights))
    ref2 = _reference_forward(y_big, params, weights)
    assert out2.shape == (B2, 1, 7)
    assert jnp.allclose(out2, ref2, rtol=1e-4, atol=1e-3), \
        float(jnp.max(jnp.abs(out2 - ref2)))

    print("KERNEL_OK")
</pallas_src>

<mosaic_0001>
module attributes {stable_mosaic.version = 11 : i64} {
  func.func @_hybrid_ode_kernel(%arg0: i32, %arg1: memref<4xf32, #tpu.memory_space<smem>>, %arg2: memref<8x128xf32, #tpu.memory_space<vmem>>, %arg3: memref<48x8xf32, #tpu.memory_space<vmem>>, %arg4: memref<32x32xf32, #tpu.memory_space<vmem>>, %arg5: memref<32x1xf32, #tpu.memory_space<vmem>>, %arg6: memref<1x32xf32, #tpu.memory_space<vmem>>, %arg7: memref<8x8xf32, #tpu.memory_space<vmem>>, %arg8: memref<8x3xf32, #tpu.memory_space<vmem>>, %arg9: memref<8x128xf32, #tpu.memory_space<vmem>>) attributes {dimension_semantics = [#tpu.dimension_semantics<parallel>], iteration_bounds = array<i64: 1>, scalar_prefetch = 1 : i64, scratch_operands = 0 : i64, tpu.core_type = #tpu.core_type<tc>, window_params = [{transform_indices = @transform_0, window_bounds = array<i64: 8, 128>}, {pipeline_mode = #tpu.pipeline_mode<synchronous>, transform_indices = @transform_1, window_bounds = array<i64: 48, 8>}, {pipeline_mode = #tpu.pipeline_mode<synchronous>, transform_indices = @transform_2, window_bounds = array<i64: 32, 32>}, {pipeline_mode = #tpu.pipeline_mode<synchronous>, transform_indices = @transform_3, window_bounds = array<i64: 32, 1>}, {pipeline_mode = #tpu.pipeline_mode<synchronous>, transform_indices = @transform_4, window_bounds = array<i64: 1, 32>}, {pipeline_mode = #tpu.pipeline_mode<synchronous>, transform_indices = @transform_5, window_bounds = array<i64: 8, 8>}, {pipeline_mode = #tpu.pipeline_mode<synchronous>, transform_indices = @transform_6, window_bounds = array<i64: 8, 3>}, {transform_indices = @transform_7, window_bounds = array<i64: 8, 128>}]} {
    %c0 = arith.constant 0 : index
    %0 = memref.load %arg1[%c0] : memref<4xf32, #tpu.memory_space<smem>>
    %c1 = arith.constant 1 : index
    %1 = memref.load %arg1[%c1] : memref<4xf32, #tpu.memory_space<smem>>
    %c2 = arith.constant 2 : index
    %2 = memref.load %arg1[%c2] : memref<4xf32, #tpu.memory_space<smem>>
    %c3 = arith.constant 3 : index
    %3 = memref.load %arg1[%c3] : memref<4xf32, #tpu.memory_space<smem>>
    %c0_0 = arith.constant 0 : index
    %c0_1 = arith.constant 0 : index
    %4 = vector.load %arg2[%c0_0, %c0_1] : memref<8x128xf32, #tpu.memory_space<vmem>>, vector<8x128xf32>
    %5 = vector.extract_strided_slice %4 {offsets = [6, 0], sizes = [1, 128], strides = [1, 1]} : vector<8x128xf32> to vector<1x128xf32>
    %c0_2 = arith.constant 0 : index
    %c0_3 = arith.constant 0 : index
    %6 = vector.load %arg3[%c0_2, %c0_3] : memref<48x8xf32, #tpu.memory_space<vmem>>, vector<48x8xf32>
    %cst = arith.constant dense<0.000000e+00> : vector<48x128xf32>
    %7 = tpu.matmul %6, %4, %cst {dimension_numbers = #tpu.dot_dimension_numbers<[1], [0], [0], [1], [0, 0, 1, 1], [], []>, precision = #tpu.contract_precision<fp32>} : vector<48x8xf32>, vector<8x128xf32>, vector<48x128xf32> -> vector<48x128xf32>
    %8 = vector.extract_strided_slice %7 {offsets = [0, 0], sizes = [8, 128], strides = [1, 1]} : vector<48x128xf32> to vector<8x128xf32>
    %9 = vector.extract_strided_slice %7 {offsets = [8, 0], sizes = [8, 128], strides = [1, 1]} : vector<48x128xf32> to vector<8x128xf32>
    %10 = arith.mulf %8, %9 : vector<8x128xf32>
    %11 = vector.broadcast %2 : f32 to vector<1x128xf32>
    %12 = arith.mulf %5, %11 : vector<1x128xf32>
    %13 = math.log %12 : vector<1x128xf32>
    %14 = vector.broadcast %1 : f32 to vector<1x128xf32>
    %15 = arith.mulf %14, %13 : vector<1x128xf32>
    %16 = math.exp %15 : vector<1x128xf32>
    %cst_4 = arith.constant 1.000000e+00 : f32
    %17 = vector.broadcast %cst_4 : f32 to vector<1x128xf32>
    %18 = arith.addf %17, %16 : vector<1x128xf32>
    %19 = vector.extract_strided_slice %10 {offsets = [0, 0], sizes = [1, 128], strides = [1, 1]} : vector<8x128xf32> to vector<1x128xf32>
    %20 = vector.broadcast %0 : f32 to vector<1x128xf32>
    %21 = arith.mulf %20, %19 : vector<1x128xf32>
    %22 = tpu.reciprocal %18 : vector<1x128xf32> -> vector<1x128xf32>
    %23 = arith.mulf %21, %22 : vector<1x128xf32>
    %24 = vector.extract_strided_slice %7 {offsets = [16, 0], sizes = [32, 128], strides = [1, 1]} : vector<48x128xf32> to vector<32x128xf32>
    %25 = math.tanh %24 : vector<32x128xf32>
    %c0_5 = arith.constant 0 : index
    %c0_6 = arith.constant 0 : index
    %26 = vector.load %arg4[%c0_5, %c0_6] : memref<32x32xf32, #tpu.memory_space<vmem>>, vector<32x32xf32>
    %cst_7 = arith.constant dense<0.000000e+00> : vector<32x128xf32>
    %27 = tpu.matmul %26, %25, %cst_7 {dimension_numbers = #tpu.dot_dimension_numbers<[1], [0], [0], [1], [0, 0, 1, 1], [], []>, precision = #tpu.contract_precision<fp32>} : vector<32x32xf32>, vector<32x128xf32>, vector<32x128xf32> -> vector<32x128xf32>
    %c0_8 = arith.constant 0 : index
    %c0_9 = arith.constant 0 : index
    %28 = vector.load %arg5[%c0_8, %c0_9] : memref<32x1xf32, #tpu.memory_space<vmem>>, vector<32x1xf32>
    %29 = vector.broadcast %28 : vector<32x1xf32> to vector<32x128xf32>
    %30 = arith.addf %27, %29 : vector<32x128xf32>
    %31 = math.tanh %30 : vector<32x128xf32>
    %c0_10 = arith.constant 0 : index
    %c0_11 = arith.constant 0 : index
    %32 = vector.load %arg6[%c0_10, %c0_11] : memref<1x32xf32, #tpu.memory_space<vmem>>, vector<1x32xf32>
    %cst_12 = arith.constant dense<0.000000e+00> : vector<1x128xf32>
    %33 = tpu.matmul %32, %31, %cst_12 {dimension_numbers = #tpu.dot_dimension_numbers<[1], [0], [0], [1], [0, 0, 1, 1], [], []>, precision = #tpu.contract_precision<fp32>} : vector<1x32xf32>, vector<32x128xf32>, vector<1x128xf32> -> vector<1x128xf32>
    %34 = vector.broadcast %3 : f32 to vector<1x128xf32>
    %35 = arith.addf %33, %34 : vector<1x128xf32>
    %cst_13 = arith.constant 0.000000e+00 : f32
    %36 = vector.broadcast %cst_13 : f32 to vector<1x128xf32>
    %37 = arith.mulf %36, %5 : vector<1x128xf32>
    %38 = arith.addf %35, %37 : vector<1x128xf32>
    %c0_14 = arith.constant 0 : index
    %c0_15 = arith.constant 0 : index
    %39 = vector.load %arg8[%c0_14, %c0_15] : memref<8x3xf32, #tpu.memory_space<vmem>>, vector<8x3xf32>
    %c0_16 = arith.constant 0 : index
    %c0_17 = arith.constant 0 : index
    %40 = vector.load %arg7[%c0_16, %c0_17] : memref<8x8xf32, #tpu.memory_space<vmem>>, vector<8x8xf32>
    %cst_18 = arith.constant dense<0.000000e+00> : vector<8x128xf32>
    %41 = tpu.matmul %40, %10, %cst_18 {dimension_numbers = #tpu.dot_dimension_numbers<[1], [0], [0], [1], [0, 0, 1, 1], [], []>, precision = #tpu.contract_precision<fp32>} : vector<8x8xf32>, vector<8x128xf32>, vector<8x128xf32> -> vector<8x128xf32>
    %42 = vector.extract_strided_slice %39 {offsets = [0, 0], sizes = [8, 1], strides = [1, 1]} : vector<8x3xf32> to vector<8x1xf32>
    %43 = vector.broadcast %42 : vector<8x1xf32> to vector<8x128xf32>
    %44 = vector.broadcast %23 : vector<1x128xf32> to vector<8x128xf32>
    %45 = arith.mulf %43, %44 : vector<8x128xf32>
    %46 = arith.addf %41, %45 : vector<8x128xf32>
    %47 = vector.extract_strided_slice %39 {offsets = [0, 1], sizes = [8, 1], strides = [1, 1]} : vector<8x3xf32> to vector<8x1xf32>
    %48 = vector.broadcast %47 : vector<8x1xf32> to vector<8x128xf32>
    %49 = vector.broadcast %38 : vector<1x128xf32> to vector<8x128xf32>
    %50 = arith.mulf %48, %49 : vector<8x128xf32>
    %51 = arith.addf %46, %50 : vector<8x128xf32>
    %52 = vector.extract_strided_slice %39 {offsets = [0, 2], sizes = [8, 1], strides = [1, 1]} : vector<8x3xf32> to vector<8x1xf32>
    %53 = vector.broadcast %52 : vector<8x1xf32> to vector<8x128xf32>
    %54 = arith.addf %51, %53 : vector<8x128xf32>
    %c0_19 = arith.constant 0 : index
    %c0_20 = arith.constant 0 : index
    %55 = vector.load %arg9[%c0_19, %c0_20] : memref<8x128xf32, #tpu.memory_space<vmem>>, vector<8x128xf32>
    tpu.vector_store %arg9[%c0_19, %c0_20], %54 {strides = array<i32>} : memref<8x128xf32, #tpu.memory_space<vmem>>, vector<8x128xf32>,
    return
  }
  func.func @transform_0(%arg0: i32, %arg1: memref<4xf32, #tpu.memory_space<smem>>) -> (i32, i32) {
    %c0_i32 = arith.constant 0 : i32
    %c0_i32_0 = arith.constant 0 : i32
    return %c0_i32, %arg0 : i32, i32
  }
  func.func @transform_1(%arg0: i32, %arg1: memref<4xf32, #tpu.memory_space<smem>>) -> (i32, i32) {
    %c0_i32 = arith.constant 0 : i32
    %c0_i32_0 = arith.constant 0 : i32
    %c0_i32_1 = arith.constant 0 : i32
    return %c0_i32, %c0_i32_0 : i32, i32
  }
  func.func @transform_2(%arg0: i32, %arg1: memref<4xf32, #tpu.memory_space<smem>>) -> (i32, i32) {
    %c0_i32 = arith.constant 0 : i32
    %c0_i32_0 = arith.constant 0 : i32
    %c0_i32_1 = arith.constant 0 : i32
    return %c0_i32, %c0_i32_0 : i32, i32
  }
  func.func @transform_3(%arg0: i32, %arg1: memref<4xf32, #tpu.memory_space<smem>>) -> (i32, i32) {
    %c0_i32 = arith.constant 0 : i32
    %c0_i32_0 = arith.constant 0 : i32
    %c0_i32_1 = arith.constant 0 : i32
    return %c0_i32, %c0_i32_0 : i32, i32
  }
  func.func @transform_4(%arg0: i32, %arg1: memref<4xf32, #tpu.memory_space<smem>>) -> (i32, i32) {
    %c0_i32 = arith.constant 0 : i32
    %c0_i32_0 = arith.constant 0 : i32
    %c0_i32_1 = arith.constant 0 : i32
    return %c0_i32, %c0_i32_0 : i32, i32
  }
  func.func @transform_5(%arg0: i32, %arg1: memref<4xf32, #tpu.memory_space<smem>>) -> (i32, i32) {
    %c0_i32 = arith.constant 0 : i32
    %c0_i32_0 = arith.constant 0 : i32
    %c0_i32_1 = arith.constant 0 : i32
    return %c0_i32, %c0_i32_0 : i32, i32
  }
  func.func @transform_6(%arg0: i32, %arg1: memref<4xf32, #tpu.memory_space<smem>>) -> (i32, i32) {
    %c0_i32 = arith.constant 0 : i32
    %c0_i32_0 = arith.constant 0 : i32
    %c0_i32_1 = arith.constant 0 : i32
    return %c0_i32, %c0_i32_0 : i32, i32
  }
  func.func @transform_7(%arg0: i32, %arg1: memref<4xf32, #tpu.memory_space<smem>>) -> (i32, i32) {
    %c0_i32 = arith.constant 0 : i32
    %c0_i32_0 = arith.constant 0 : i32
    return %c0_i32, %arg0 : i32, i32
  }
}

</mosaic_0001>

<bundles_post_ra>
// kernel: tpu_custom_call.1
= control target key start
LH: loop header
LB: loop body
LE: loop exit
PB: predicated region body
PF: predicated region fallthrough
CT: control target
= control target key end

     0   :  { %s3305_s0 = inlined_call_operand.vmem [shape: f32[4], index: 0, kind: input, shape index: {}]   ;;  %s3306_s1 = inlined_call_operand.vmem [shape: f32[8,128], index: 1, kind: input, shape index: {}]   ;;  %s3307_s2 = inlined_call_operand.vmem [shape: f32[48,8], index: 2, kind: input, shape index: {}]   ;;  %s3308_s3 = inlined_call_operand.vmem [shape: f32[32,32], index: 3, kind: input, shape index: {}]   ;;  %s3309_s4 = inlined_call_operand.vmem [shape: f32[32,1], index: 4, kind: input, shape index: {}]   ;;  %s3310_s5 = inlined_call_operand.vmem [shape: f32[1,32], index: 5, kind: input, shape index: {}]   ;;  %s3311_s6 = inlined_call_operand.vmem [shape: f32[8,8], index: 6, kind: input, shape index: {}]   ;;  %s3312_s7 = inlined_call_operand.vmem [shape: f32[8,3], index: 7, kind: input, shape index: {}]   ;;  %s3313_s8 = inlined_call_operand.hbm [shape: f32[8,128], index: 8, kind: output, shape index: {}]  }
   0x1   :  { %s13_s29 = sshll.u32 %s3305_s0, 4  ;;  %s14_s29 = int_to_ptr.vmem [resolvable:$true] %s13_s29 }
   0x2   :  { %s2944_s30 = scalar_lea.vmem %s14_s29, 16  ;;  %p2949_p1 = scmp.lt.s32.totalorder %s14_s29, %s14_s29 }
   0x3   :  { %p2945_p0 = scmp.ne.s32.totalorder %s14_s29, %s2944_s30  ;;  %p2950_p2 = scmp.lt.s32.totalorder %s2944_s30, %s2944_s30 }
   0x5   :  { %p2951_p3 = por %p2950_p2, %p2949_p1 }
   0x7   :  { %p2952_p4 = pnand %p2951_p3, %p2945_p0 }
   0x9   :  { %2955 = shalt.err (!%p2952_p4)  }
   0xa   :  { %s2982_s9 = smov [#allocation3]  }
   0xb   :  { %16 = dma.vmem_to_smem %s14_s29, 16, %s2982_s9, [#allocation2] }
   0xc   :  { %2978 = dma.done.wait [#allocation2], 16 }
   0xd   :  { %2979 = vsyncadd [#allocation2], 4294967280 }
   0xe   :  { %18 = sfence }
   0xf   :  { %v3041_v0 = vld [vmem:[%s3306_s1] sm:$0xff]  ;;  %vm45_vm0 = vcmask 64512   ;;  %v40_v2 = vld [vmem:[%s3307_s2 + $0x8] sm:$0xff]  ;;  %v41_v6 = vld [vmem:[%s3307_s2 + $0x10] sm:$0xff]  ;;  %v2983_v9 = vmov 0  }
  0x10   :  { %v39_v1 = vld [vmem:[%s3307_s2] sm:$0xff]  ;;  %v3050_v3 = vand.u32 4294901760, %v3041_v0  ;;  %v50_v5 = vsel %vm45_vm0, %v40_v2, 0  ;;  %v42_v7 = vld [vmem:[%s3307_s2 + $0x18] sm:$0xff]  ;;  %2918 = vset.pattern.permute.xlu0 %v2983_v9  ;;  %2919 = vset.pattern.permute.xlu1 %v2983_v9  ;;  %v53_v12 = vsel %vm45_vm0, %v41_v6, 0  ;;  %v44_v14 = vld [vmem:[%s3307_s2 + $0x28] sm:$0xff] }
  0x11   :  { %v47_v4 = vsel %vm45_vm0, %v39_v1, 0  ;;  %v43_v8 = vld [vmem:[%s3307_s2 + $0x20] sm:$0xff]  ;;  %v3065_v11 = vand.u32 4294901760, %v50_v5  ;;  %v56_v13 = vsel %vm45_vm0, %v42_v7, 0  ;;  %v3078_v17 = vand.u32 4294901760, %v53_v12  ;;  %v751_v24 = vld [vmem:[%s3309_s4 + $0x8] sm:$0xff] }
  0x12   :  { %v3063_v10 = vand.u32 4294901760, %v47_v4  ;;  %v750_v15 = vld [vmem:[%s3309_s4] sm:$0xff]  ;;  %2526 = vmatprep.subr.mxu0 %v3050_v3  ;;  %v192_v16 = vsub.f32 %v3041_v0, %v3050_v3  ;;  %v3080_v18 = vand.u32 4294901760, %v56_v13  ;;  %v59_v19 = vsel %vm45_vm0, %v43_v8, 0 }
  0x13   :  { %756 = vperm.xlu0 %2918, %v750_v15   ;;  %2527 = vmatpush3.msra.mxu0 %v3050_v3  ;;  %v141_v21 = vsub.f32 %v50_v5, %v3065_v11  ;;  %v3086_v22 = vand.u32 4294901760, %v59_v19  ;;  %v62_v23 = vsel %vm45_vm0, %v44_v14, 0 }
  0x14   :  { %v131_v20 = vsub.f32 %v47_v4, %v3063_v10 }
  0x15   :  { %19 = vsyncpa [#allocation5], 0  ;;  %v193_v25 = vand.u32 4294901760, %v192_v16  ;;  %v151_v26 = vsub.f32 %v53_v12, %v3078_v17  ;;  %v161_v27 = vsub.f32 %v56_v13, %v3080_v18  ;;  %v3094_v28 = vand.u32 4294901760, %v62_v23  ;;  %v3101_v39 = vld [vmem:[%s3312_s7] sm:$0xff]  ;;  %v752_v59 = vld [vmem:[%s3309_s4 + $0x10] sm:$0xff] }
  0x16   :  { %v132_v29 = vand.u32 4294901760, %v131_v20  ;;  %v142_v30 = vand.u32 4294901760, %v141_v21  ;;  %v171_v31 = vsub.f32 %v59_v19, %v3086_v22  ;;  %v746_v52 = vld [vmem:[%s3308_s3] sm:$0xff]  ;;  %vm774_vm1 = vcmask 261120   ;;  %766 = vperm.xlu1 %2919, %v752_v59   ;;  %v753_v60 = vld [vmem:[%s3309_s4 + $0x18] sm:$0xff]  ;;  %v747_v1 = vld [vmem:[%s3308_s3 + $0x8] sm:$0xff] }
  0x17   :  { %v194_v32 = vsub.f32 %v192_v16, %v193_v25  ;;  %v152_v33 = vand.u32 4294901760, %v151_v26  ;;  %v162_v34 = vand.u32 4294901760, %v161_v27  ;;  %v181_v35 = vsub.f32 %v62_v23, %v3094_v28  ;;  %761 = vperm.xlu0 %2918, %v751_v24   ;;  %v749_v7 = vld [vmem:[%s3308_s3 + $0x18] sm:$0xff]  ;;  %s2391_s16 = sld [smem:[#allocation3 + $0x1]]  ;;  %s2393_s1 = sld [smem:[#allocation3 + $0x3]] }
  0x18   :  { %v133_v36 = vsub.f32 %v131_v20, %v132_v29  ;;  %v143_v37 = vsub.f32 %v141_v21, %v142_v30  ;;  %v172_v38 = vand.u32 4294901760, %v171_v31  ;;  %v776_v53 = vsel %vm774_vm1, %v746_v52, 0  ;;  %s34_s17 = sld [smem:[#allocation3]]  ;;  %s2989_s18 = smov [#allocation4]  }
  0x19   :  { %v195_v40 = vand.u32 4294901760, %v194_v32  ;;  %v153_v41 = vsub.f32 %v151_v26, %v152_v33  ;;  %v163_v42 = vsub.f32 %v161_v27, %v162_v34  ;;  %v182_v43 = vand.u32 4294901760, %v181_v35  ;;  %s2383_s19 = sshll.u32 %s2989_s18, 4  ;;  %s2384_s19 = int_to_ptr.vmem [resolvable:$true] %s2383_s19 }
  0x1a   :  { %v134_v44 = vand.u32 4294901760, %v133_v36  ;;  %v144_v45 = vand.u32 4294901760, %v143_v37  ;;  %v173_v46 = vsub.f32 %v171_v31, %v172_v38  ;;  %v3130_v54 = vand.u32 4294901760, %v776_v53  ;;  %771 = vperm.xlu1 %2919, %v753_v60   ;;  %s2956_s20 = scalar_lea.vmem %s2384_s19, 128  ;;  %p2961_p6 = scmp.lt.s32.totalorder %s2384_s19, %s2384_s19 }
  0x1b   :  { %2537 = vmatprep.subr.mxu0 %v195_v40  ;;  %v154_v47 = vand.u32 4294901760, %v153_v41  ;;  %1904 = vperm.xlu0 %2918, %v3101_v39   ;;  %v164_v48 = vand.u32 4294901760, %v163_v42  ;;  %v183_v49 = vsub.f32 %v181_v35, %v182_v43  ;;  %v779_v5 = vsel %vm774_vm1, %v747_v1, 0  ;;  %p2957_p5 = scmp.ne.s32.totalorder %s2384_s19, %s2956_s20  ;;  %p2962_p7 = scmp.lt.s32.totalorder %s2956_s20, %s2956_s20 }
  0x1c   :  { %2528 = vmatprep.mubr.f32.mxu0 %v134_v44  ;;  %v174_v50 = vand.u32 4294901760, %v173_v46  ;;  %v3133_v55 = vsub.f32 %v776_v53, %v3130_v54  ;;  %v3158_v9 = vand.u32 4294901760, %v779_v5  ;;  %v785_v12 = vsel %vm774_vm1, %v749_v7, 0 }
  0x1d   :  { %2529 = vmatmul.mubr.f32.vlgmr.msra.gmra.mrb[0].mxu0 %v144_v45  ;;  %v184_v51 = vand.u32 4294901760, %v183_v49  ;;  %v3166_v14 = vand.u32 4294901760, %v785_v12  ;;  %vm2985_vm2 = vmmov 0   ;;  %p2963_p8 = por %p2962_p7, %p2961_p6 }
  0x1e   :  { %2538 = vmatpush3.msra.mxu0 %v195_v40  ;;  %2531 = vmatprep.mubr.f32.mxu0 %v154_v47  ;;  %v858_v56 = vand.u32 4294901760, %v3133_v55  ;;  %v3164_v13 = vsub.f32 %v779_v5, %v3158_v9  ;;  %v1405_v5 = vld [vmem:[%s3310_s5] sm:$0x1] }
  0x1f   :  { %2548 = vmatprep.subr.mxu0 %v192_v16  ;;  %p2964_p9 = pnand %p2963_p8, %p2957_p5 }
  0x20   :  { %v859_v57 = vsub.f32 %v3133_v55, %v858_v56  ;;  %v868_v19 = vand.u32 4294901760, %v3164_v13 }
  0x21   :  { %2532 = vmatmul.mubr.f32.gmra.mrb[2].mxu0 %v164_v48 }
  0x22   :  { %2534 = vmatprep.mubr.f32.mxu0 %v174_v50  ;;  %v860_v58 = vand.u32 4294901760, %v859_v57 }
  0x24   :  { %2600 = vmatprep.mubr.f32.mxu1 %v860_v58 }
  0x25   :  { %2535 = vmatmul.mubr.f32.gmra.mrb[4].mxu0 %v184_v51 }
  0x26   :  { %2539 = vmatprep.mubr.f32.mxu0 %v3063_v10 }
  0x29   :  { %2540 = vmatmul.mubr.f32.vlgmr.msra.gmra.mrb[0].mxu0 %v3065_v11 }
  0x2a   :  { %2549 = vmatpush3.msra.mxu0 %v192_v16  ;;  %2542 = vmatprep.mubr.f32.mxu0 %v3078_v17 }
  0x2b   :  { %2559 = vmatprep.subr.mxu0 %v3050_v3 }
  0x2d   :  { %2543 = vmatmul.mubr.f32.gmra.mrb[2].mxu0 %v3080_v18 }
  0x2e   :  { %2545 = vmatprep.mubr.f32.mxu0 %v3086_v22 }
  0x31   :  { %2546 = vmatmul.mubr.f32.gmra.mrb[4].mxu0 %v3094_v28 }
  0x32   :  { %2550 = vmatprep.mubr.f32.mxu0 %v131_v20 }
  0x35   :  { %2551 = vmatmul.mubr.f32.vlgmr.msra.gmra.mrb[0].mxu0 %v141_v21  ;;  %v3173_v21 = vsub.f32 %v785_v12, %v3166_v14 }
  0x36   :  { %2560 = vmatpush3.msra.mxu0 %v3050_v3  ;;  %2553 = vmatprep.mubr.f32.mxu0 %v151_v26 }
  0x37   :  { %2570 = vmatprep.subr.mxu0 %v193_v25 }
  0x39   :  { %2554 = vmatmul.mubr.f32.gmra.mrb[2].mxu0 %v161_v27 }
  0x3a   :  { %2556 = vmatprep.mubr.f32.mxu0 %v171_v31 }
  0x3d   :  { %2557 = vmatmul.mubr.f32.gmra.mrb[4].mxu0 %v181_v35 }
  0x3e   :  { %2561 = vmatprep.mubr.f32.mxu0 %v132_v29  ;;  %v869_v29 = vsub.f32 %v3164_v13, %v868_v19 }
  0x41   :  { %2562 = vmatmul.mubr.f32.vlgmr.msra.gmra.mrb[0].mxu0 %v142_v30 }
  0x42   :  { %2571 = vmatpush3.msra.mxu0 %v193_v25  ;;  %2564 = vmatprep.mubr.f32.mxu0 %v152_v33  ;;  %v888_v33 = vand.u32 4294901760, %v3173_v21 }
  0x43   :  { %2581 = vmatprep.subr.mxu0 %v3050_v3 }
  0x44   :  { %v889_v47 = vsub.f32 %v3173_v21, %v888_v33 }
  0x45   :  { %2565 = vmatmul.mubr.f32.gmra.mrb[2].mxu0 %v162_v34 }
  0x46   :  { %2567 = vmatprep.mubr.f32.mxu0 %v172_v38  ;;  %v890_v59 = vand.u32 4294901760, %v889_v47 }
  0x49   :  { %2568 = vmatmul.mubr.f32.gmra.mrb[4].mxu0 %v182_v43  ;;  %v870_v43 = vand.u32 4294901760, %v869_v29 }
  0x4a   :  { %2572 = vmatprep.mubr.f32.mxu0 %v3063_v10 }
  0x4d   :  { %2573 = vmatmul.mubr.f32.vlgmr.msra.gmra.mrb[0].mxu0 %v3065_v11 }
  0x4e   :  { %2582 = vmatpush3.msra.mxu0 %v3050_v3  ;;  %2575 = vmatprep.mubr.f32.mxu0 %v3078_v17  ;;  %v748_v3 = vld [vmem:[%s3308_s3 + $0x10] sm:$0xff] }
  0x4f   :  { %v782_v6 = vsel %vm774_vm1, %v748_v3, 0 }
  0x51   :  { %2576 = vmatmul.mubr.f32.gmra.mrb[2].mxu0 %v3080_v18 }
  0x52   :  { %2578 = vmatprep.mubr.f32.mxu0 %v3086_v22 }
  0x55   :  { %2579 = vmatmul.mubr.f32.gmra.mrb[4].mxu0 %v3094_v28 }
  0x56   :  { %2583 = vmatprep.mubr.f32.mxu0 %v3063_v10 }
  0x59   :  { %2584 = vmatmul.mubr.f32.vlgmr.msra.gmra.mrb[0].mxu0 %v3065_v11  ;;  %v3160_v11 = vand.u32 4294901760, %v782_v6 }
  0x5a   :  { %2586 = vmatprep.mubr.f32.mxu0 %v3078_v17 }
  0x5b   :  { %v3169_v15 = vsub.f32 %v782_v6, %v3160_v11 }
  0x5d   :  { %2587 = vmatmul.mubr.f32.gmra.mrb[2].mxu0 %v3080_v18  ;;  %v878_v23 = vand.u32 4294901760, %v3169_v15 }
  0x5e   :  { %2589 = vmatprep.mubr.f32.mxu0 %v3086_v22 }
  0x5f   :  { %v879_v36 = vsub.f32 %v3169_v15, %v878_v23 }
  0x61   :  { %2590 = vmatmul.mubr.f32.gmra.mrb[4].mxu0 %v3094_v28  ;;  %v880_v50 = vand.u32 4294901760, %v879_v36 }
  0x92   :  { %v757_v1 = vpop.permute.xlu0 %756 }
  0x96   :  { %v762_v3 = vpop.permute.xlu0 %761 }
 0x12c   :  { %v2585_v61 = vpop.f32.mrb[0].mxu0 }
 0x12d   :  { %v691_v62 = vpop.f32.mrb[1].mxu0 }
 0x12e   :  { %v3145_v63 = vmul.f32 %v2585_v61, %v691_v62  ;;  %v2988_v62 = vmov 2  }
 0x12f   :  { %2921 = vset.pattern.permute.xlu0 %v2988_v62 }
 0x130   :  { %v2588_v2 = vpop.f32.mrb[2].mxu0  ;;  %2372 = vperm.xlu0 %2921, %v3101_v39  }
 0x131   :  { %2922 = vtanh.f32 %v2588_v2  ;;  %v703_v4 = vpop.f32.mrb[3].mxu0  ;;  %v767_v2 = vpop.permute.xlu1 %766 }
 0x132   :  { %2924 = vtanh.f32 %v703_v4 }
 0x134   :  { %v2591_v8 = vpop.f32.mrb[4].mxu0 }
 0x135   :  { %2926 = vtanh.f32 %v2591_v8  ;;  %v715_v10 = vpop.f32.mrb[5].mxu0 }
 0x136   :  { %2928 = vtanh.f32 %v715_v10  ;;  %v772_v10 = vpop.permute.xlu1 %771 }
 0x13b   :  { %v2923_v16 = vpop.eup %2922 }
 0x13c   :  { %v2925_v17 = vpop.eup %2924  ;;  %v791_v18 = vand.u32 4294901760, %v2923_v16 }
 0x13d   :  { %v788_v20 = vand.u32 4294901760, %v2925_v17 }
 0x13e   :  { %v905_v22 = vsub.f32 %v2923_v16, %v791_v18 }
 0x13f   :  { %v2927_v24 = vpop.eup %2926  ;;  %v3176_v25 = vpack.c.bf16 %v791_v18, %v788_v20  ;;  %v898_v26 = vsub.f32 %v2925_v17, %v788_v20 }
 0x140   :  { %v2929_v27 = vpop.eup %2928  ;;  %v797_v28 = vand.u32 4294901760, %v2927_v24  ;;  %v906_v30 = vand.u32 4294901760, %v905_v22 }
 0x141   :  { %v794_v31 = vand.u32 4294901760, %v2929_v27  ;;  %2773 = vmatprep.subr.bf16.mxu1 %v3176_v25  ;;  %v899_v32 = vand.u32 4294901760, %v898_v26  ;;  %v2788_v34 = vpack.c.bf16 %v905_v22, %v898_v26 }
 0x142   :  { %2775 = vmatpush3.bf16.msra.mxu1 %v3176_v25  ;;  %v907_v35 = vsub.f32 %v905_v22, %v906_v30  ;;  %v919_v37 = vsub.f32 %v2927_v24, %v797_v28 }
 0x143   :  { %v2776_v38 = vpack.c.bf16 %v797_v28, %v794_v31  ;;  %v900_v40 = vsub.f32 %v898_v26, %v899_v32  ;;  %v912_v41 = vsub.f32 %v2929_v27, %v794_v31  ;;  %v2804_v42 = vpack.c.bf16 %v906_v30, %v899_v32 }
 0x144   :  { %v908_v44 = vand.u32 4294901760, %v907_v35  ;;  %v920_v45 = vand.u32 4294901760, %v919_v37 }
 0x145   :  { %2777 = vmatprep.subr.bf16.mxu1 %v2776_v38  ;;  %v901_v46 = vand.u32 4294901760, %v900_v40  ;;  %v913_v48 = vand.u32 4294901760, %v912_v41  ;;  %v2792_v49 = vpack.c.bf16 %v919_v37, %v912_v41 }
 0x146   :  { %2779 = vmatpush3.bf16.msra.mxu1 %v2776_v38  ;;  %v921_v51 = vsub.f32 %v919_v37, %v920_v45 }
 0x147   :  { %v2780_v52 = vpack.c.bf16 %v908_v44, %v901_v46  ;;  %v914_v53 = vsub.f32 %v912_v41, %v913_v48  ;;  %v2808_v57 = vpack.c.bf16 %v920_v45, %v913_v48  ;;  %v1901_v48 = vld [vmem:[%s3311_s6] sm:$0xff]  ;;  %s2392_s6 = sld [smem:[#allocation3 + $0x2]] }
 0x148   :  { %v922_v58 = vand.u32 4294901760, %v921_v51 }
 0x149   :  { %2601 = vmatmul.mubr.f32.vlgmr.msra.gmra.mrb[0].mxu1 %v870_v43  ;;  %2781 = vmatprep.subr.bf16.mxu1 %v2780_v52  ;;  %v915_v60 = vand.u32 4294901760, %v914_v53 }
 0x14a   :  { %2783 = vmatpush3.bf16.msra.mxu1 %v2780_v52  ;;  %2603 = vmatprep.mubr.f32.mxu1 %v880_v50 }
 0x14b   :  { %v2784_v61 = vpack.c.bf16 %v922_v58, %v915_v60  ;;  %v1913_v58 = vsel %vm45_vm0, %v1901_v48, 0 }
 0x14d   :  { %2604 = vmatmul.mubr.f32.gmra.mrb[2].mxu1 %v890_v59  ;;  %2785 = vmatprep.subr.bf16.mxu1 %v2784_v61 }
 0x14e   :  { %2787 = vmatpush3.bf16.msra.mxu1 %v2784_v61  ;;  %2614 = vmatprep.mubr.f32.mxu1 %v3130_v54  ;;  %v1981_v61 = vand.u32 4294901760, %v1913_v58 }
 0x14f   :  { %2789 = vmatprep.subr.bf16.mxu1 %v2788_v34 }
 0x150   :  { %v1982_v62 = vsub.f32 %v1913_v58, %v1981_v61 }
 0x151   :  { %2615 = vmatmul.mubr.f32.vlgmr.msra.gmra.mrb[0].mxu1 %v3158_v9 }
 0x152   :  { %2791 = vmatpush3.bf16.msra.mxu1 %v2788_v34  ;;  %2617 = vmatprep.mubr.f32.mxu1 %v3160_v11 }
 0x153   :  { %2793 = vmatprep.subr.bf16.mxu1 %v2792_v49 }
 0x155   :  { %2618 = vmatmul.mubr.f32.gmra.mrb[2].mxu1 %v3166_v14 }
 0x156   :  { %2795 = vmatpush3.bf16.msra.mxu1 %v2792_v49  ;;  %2628 = vmatprep.mubr.f32.mxu1 %v3133_v55  ;;  %v2984_v55 = vmov 0.0|0.0  }
 0x157   :  { %2797 = vmatprep.subr.bf16.mxu1 %v3176_v25  ;;  %2838 = vmatprep.subr.bf16.mxu0 %v2984_v55 }
 0x159   :  { %2629 = vmatmul.mubr.f32.vlgmr.msra.gmra.mrb[0].mxu1 %v3164_v13 }
 0x15a   :  { %2799 = vmatpush3.bf16.msra.mxu1 %v3176_v25  ;;  %2631 = vmatprep.mubr.f32.mxu1 %v3169_v15 }
 0x15b   :  { %2801 = vmatprep.subr.bf16.mxu1 %v2776_v38 }
 0x15d   :  { %2632 = vmatmul.mubr.f32.gmra.mrb[2].mxu1 %v3173_v21  ;;  %v3233_v21 = vand.u32 4294901760, %v3145_v63 }
 0x15e   :  { %2803 = vmatpush3.bf16.msra.mxu1 %v2776_v38  ;;  %2642 = vmatprep.mubr.f32.mxu1 %v858_v56  ;;  %v2986_v56 = vmov 0.0  }
 0x15f   :  { %2805 = vmatprep.subr.bf16.mxu1 %v2804_v42  ;;  %2717 = vmatprep.mubr.msk.f32.mxu0 %vm2985_vm2, %v2986_v56 }
 0x161   :  { %2643 = vmatmul.mubr.f32.vlgmr.msra.gmra.mrb[0].mxu1 %v868_v19 }
 0x162   :  { %2807 = vmatpush3.bf16.msra.mxu1 %v2804_v42  ;;  %2645 = vmatprep.mubr.f32.mxu1 %v878_v23 }
 0x163   :  { %2809 = vmatprep.subr.bf16.mxu1 %v2808_v57 }
 0x165   :  { %2646 = vmatmul.mubr.f32.gmra.mrb[2].mxu1 %v888_v33  ;;  %v3238_v33 = vsub.f32 %v3145_v63, %v3233_v21 }
 0x166   :  { %2811 = vmatpush3.bf16.msra.mxu1 %v2808_v57  ;;  %2656 = vmatprep.mubr.f32.mxu1 %v3130_v54 }
 0x167   :  { %2813 = vmatprep.subr.bf16.mxu1 %v3176_v25  ;;  %v1994_v49 = vand.u32 4294901760, %v3238_v33 }
 0x169   :  { %2657 = vmatmul.mubr.f32.vlgmr.msra.gmra.mrb[0].mxu1 %v3158_v9  ;;  %v1995_v60 = vsub.f32 %v3238_v33, %v1994_v49 }
 0x16a   :  { %2815 = vmatpush3.bf16.msra.mxu1 %v3176_v25  ;;  %2659 = vmatprep.mubr.f32.mxu1 %v3160_v11 }
 0x16b   :  { %2817 = vmatprep.subr.bf16.mxu1 %v2776_v38 }
 0x16d   :  { %2660 = vmatmul.mubr.f32.gmra.mrb[2].mxu1 %v3166_v14 }
 0x16e   :  { %2819 = vmatpush3.bf16.msra.mxu1 %v2776_v38  ;;  %2670 = vmatprep.mubr.f32.mxu1 %v3130_v54  ;;  %v2987_v54 = vmov 1  }
 0x16f   :  { %2820 = vmatprep.subr.bf16.mxu1 %v2984_v55  ;;  %2920 = vset.pattern.permute.xlu1 %v2987_v54  ;;  %v1996_v54 = vand.u32 4294901760, %v1995_v60 }
 0x170   :  { %2362 = vperm.xlu1 %2920, %v3101_v39  }
 0x171   :  { %2671 = vmatmul.mubr.f32.vlgmr.msra.gmra.mrb[0].mxu1 %v3158_v9  ;;  %v1408_v9 = vsel %vm774_vm1, %v1405_v5, 0 }
 0x172   :  { %2673 = vmatprep.mubr.f32.mxu1 %v3160_v11 }
 0x175   :  { %2674 = vmatmul.mubr.f32.gmra.mrb[2].mxu1 %v3166_v14  ;;  %v3226_v14 = vand.u32 4294901760, %v1408_v9 }
 0x176   :  { %2684 = vmatprep.mubr.msk.f32.mxu1 %vm2985_vm2, %v2986_v56 }
 0x177   :  { %v3229_v15 = vsub.f32 %v1408_v9, %v3226_v14 }
 0x179   :  { %v1481_v19 = vand.u32 4294901760, %v3229_v15 }
 0x17b   :  { %v1482_v28 = vsub.f32 %v3229_v15, %v1481_v19 }
 0x17d   :  { %v1483_v41 = vand.u32 4294901760, %v1482_v28 }
 0x244   :  { %v2672_v4 = vpop.f32.mrb[0].mxu1 }
 0x245   :  { %v2856_v6 = vadd.f32 %v2672_v4, %v762_v3  ;;  %v1379_v7 = vpop.f32.mrb[1].mxu1 }
 0x246   :  { %v2857_v8 = vadd.f32 %v1379_v7, %v757_v1  ;;  %v1983_v1 = vand.u32 4294901760, %v1982_v62  ;;  %v730_v7 = vstv %s2391_s16 }
 0x247   :  { %2930 = vtanh.f32 %v2856_v6 }
 0x248   :  { %2932 = vtanh.f32 %v2857_v8  ;;  %v2675_v11 = vpop.f32.mrb[2].mxu1 }
 0x249   :  { %v2858_v12 = vadd.f32 %v2675_v11, %v772_v10  ;;  %v1391_v13 = vpop.f32.mrb[3].mxu1 }
 0x24a   :  { %v2859_v39 = vadd.f32 %v1391_v13, %v767_v2  ;;  %v1984_v2 = vsub.f32 %v1982_v62, %v1983_v1 }
 0x24b   :  { %2934 = vtanh.f32 %v2858_v12 }
 0x24c   :  { %2936 = vtanh.f32 %v2859_v39  ;;  %v1985_v3 = vand.u32 4294901760, %v1984_v2 }
 0x251   :  { %v2931_v16 = vpop.eup %2930 }
 0x252   :  { %v2933_v17 = vpop.eup %2932  ;;  %v1414_v18 = vand.u32 4294901760, %v2931_v16 }
 0x253   :  { %v1411_v20 = vand.u32 4294901760, %v2933_v17 }
 0x254   :  { %v1498_v22 = vsub.f32 %v2931_v16, %v1414_v18 }
 0x255   :  { %v2935_v23 = vpop.eup %2934  ;;  %v2821_v24 = vpack.c.bf16 %v1414_v18, %v1411_v20  ;;  %v1491_v25 = vsub.f32 %v2933_v17, %v1411_v20 }
 0x256   :  { %v2937_v26 = vpop.eup %2936  ;;  %v1420_v27 = vand.u32 4294901760, %v2935_v23  ;;  %v1499_v29 = vand.u32 4294901760, %v1498_v22 }
 0x257   :  { %2822 = vmatpush3.bf16.msra.mxu1 %v2821_v24  ;;  %2840 = vmatpush3.bf16.msra.mxu0 %v2821_v24  ;;  %v1417_v30 = vand.u32 4294901760, %v2937_v26  ;;  %v1492_v31 = vand.u32 4294901760, %v1491_v25  ;;  %v2833_v32 = vpack.c.bf16 %v1498_v22, %v1491_v25 }
 0x258   :  { %2823 = vmatprep.subr.bf16.mxu1 %v2984_v55  ;;  %2841 = vmatprep.subr.bf16.mxu0 %v2984_v55  ;;  %v1512_v34 = vsub.f32 %v2935_v23, %v1420_v27  ;;  %v1500_v35 = vsub.f32 %v1498_v22, %v1499_v29  ;;  %v735_v23 = vstv %s34_s17 }
 0x259   :  { %v2824_v36 = vpack.c.bf16 %v1420_v27, %v1417_v30  ;;  %v1505_v37 = vsub.f32 %v2937_v26, %v1417_v30  ;;  %v1493_v38 = vsub.f32 %v1491_v25, %v1492_v31  ;;  %v2845_v40 = vpack.c.bf16 %v1499_v29, %v1492_v31 }
 0x25a   :  { %v1501_v42 = vand.u32 4294901760, %v1500_v35  ;;  %v1513_v43 = vand.u32 4294901760, %v1512_v34  ;;  %v736_v26 = vmul.f32 %v735_v23, %v3145_v63 }
 0x25b   :  { %2825 = vmatpush3.bf16.msra.mxu1 %v2824_v36  ;;  %2843 = vmatpush3.bf16.msra.mxu0 %v2824_v36  ;;  %v1494_v44 = vand.u32 4294901760, %v1493_v38  ;;  %v1506_v45 = vand.u32 4294901760, %v1505_v37  ;;  %v2836_v46 = vpack.c.bf16 %v1512_v34, %v1505_v37 }
 0x25c   :  { %2826 = vmatprep.subr.bf16.mxu1 %v2984_v55  ;;  %2850 = vmatprep.subr.bf16.mxu0 %v2984_v55  ;;  %v1514_v47 = vsub.f32 %v1512_v34, %v1513_v43 }
 0x25d   :  { %v2827_v50 = vpack.c.bf16 %v1501_v42, %v1494_v44  ;;  %v1507_v51 = vsub.f32 %v1505_v37, %v1506_v45  ;;  %v2848_v52 = vpack.c.bf16 %v1513_v43, %v1506_v45  ;;  %v1905_v42 = vpop.permute.xlu0 %1904 }
 0x25e   :  { %2685 = vmatmul.mubr.f32.vlgmr.msra.gmra.mrb[4].mxu1 %v1483_v41  ;;  %2718 = vmatmul.mubr.f32.vlgmr.msra.gmra.mrb[6].mxu0 %v1481_v19  ;;  %v1515_v53 = vand.u32 4294901760, %v1514_v47  ;;  %v1895_v41 = vmul.f32 0.0, %v3041_v0 }
 0x25f   :  { %2828 = vmatpush3.bf16.msra.mxu1 %v2827_v50  ;;  %2852 = vmatpush3.bf16.msra.mxu0 %v2821_v24  ;;  %v1508_v57 = vand.u32 4294901760, %v1507_v51 }
 0x260   :  { %2829 = vmatprep.subr.bf16.mxu1 %v2984_v55  ;;  %2853 = vmatprep.subr.bf16.mxu0 %v2984_v55  ;;  %v1897_v47 = vrot.slane %v1895_v41, 6 }
 0x261   :  { %v2830_v59 = vpack.c.bf16 %v1515_v53, %v1508_v57  ;;  %2695 = vmatprep.mubr.msk.f32.mxu1 %vm2985_vm2, %v2986_v56  ;;  %2739 = vmatprep.mubr.msk.f32.mxu0 %vm2985_vm2, %v2986_v56 }
 0x263   :  { %2831 = vmatpush3.bf16.msra.mxu1 %v2830_v59  ;;  %2855 = vmatpush3.bf16.msra.mxu0 %v2824_v36 }
 0x264   :  { %2832 = vmatprep.subr.bf16.mxu1 %v2984_v55  ;;  %2747 = vmatprep.subr.mxu0 %v2986_v56 }
 0x266   :  { %2696 = vmatmul.mubr.f32.vlgmr.msra.gmra.mrb[6].mxu1 %v3226_v14  ;;  %2740 = vmatmul.mubr.f32.vlgmr.msra.gmra.mrb[8].mxu0 %v3226_v14 }
 0x267   :  { %2834 = vmatpush3.bf16.msra.mxu1 %v2833_v32  ;;  %2748 = vmatpush3.msra.mxu0 %v1996_v54 }
 0x268   :  { %2749 = vmatprep.mubr.msk.f32.mxu0 %vm2985_vm2, %v2986_v56  ;;  %2757 = vmatprep.subr.mxu0 %v2986_v56 }
 0x269   :  { %2835 = vmatprep.subr.bf16.mxu1 %v2984_v55  ;;  %2706 = vmatprep.mubr.msk.f32.mxu1 %vm2985_vm2, %v2986_v56 }
 0x26a   :  { %2750 = vmatmul.mubr.f32.vlgmr.msra.gmra.mrb[10].mxu0 %v1981_v61 }
 0x26b   :  { %2758 = vmatpush3.msra.mxu0 %v3233_v21  ;;  %2837 = vmatpush3.bf16.msra.mxu1 %v2836_v46 }
 0x26c   :  { %2759 = vmatprep.mubr.msk.f32.mxu0 %vm2985_vm2, %v2986_v56  ;;  %2767 = vmatprep.subr.mxu0 %v2986_v56 }
 0x26d   :  { %2844 = vmatprep.subr.bf16.mxu1 %v2984_v55 }
 0x26e   :  { %2707 = vmatmul.mubr.f32.vlgmr.msra.gmra.mrb[8].mxu1 %v3229_v15  ;;  %2760 = vmatmul.mubr.f32.vlgmr.msra.gmra.mrb[12].mxu0 %v1983_v1 }
 0x26f   :  { %2768 = vmatpush3.msra.mxu0 %v3233_v21  ;;  %2846 = vmatpush3.bf16.msra.mxu1 %v2845_v40 }
 0x270   :  { %2847 = vmatprep.subr.bf16.mxu1 %v2984_v55  ;;  %2728 = vmatprep.mubr.msk.f32.mxu1 %vm2985_vm2, %v2986_v56  ;;  %v726_v55 = vstv %s2392_s6 }
 0x271   :  { %2769 = vmatprep.mubr.msk.f32.mxu0 %vm2985_vm2, %v2986_v56  ;;  %v727_v4 = vmul.f32 %v726_v55, %v3041_v0 }
 0x272   :  { %2770 = vmatmul.mubr.f32.vlgmr.msra.gmra.mrb[14].mxu0 %v1981_v61 }
 0x273   :  { %2849 = vmatpush3.bf16.msra.mxu1 %v2848_v52  ;;  %2938 = vlog2.f32 %v727_v4 }
 0x274   :  { %2742 = vmatprep.subr.mxu1 %v2986_v56 }
 0x276   :  { %2729 = vmatmul.mubr.f32.vlgmr.msra.gmra.mrb[10].mxu1 %v3226_v14  ;;  %v1406_v14 = vstv %s2393_s1 }
 0x277   :  { %2743 = vmatpush3.msra.mxu1 %v3233_v21  ;;  %2744 = vmatprep.mubr.msk.f32.mxu1 %vm2985_vm2, %v2986_v56  ;;  %v1907_v21 = vlaneseq }
 0x278   :  { %2752 = vmatprep.subr.mxu1 %v2986_v56 }
 0x279   :  { %v1908_v27 = vshrl.u32 %v1907_v21, 7 }
 0x27a   :  { %2745 = vmatmul.mubr.f32.vlgmr.msra.gmra.mrb[12].mxu1 %v1985_v3  ;;  %v2373_v3 = vpop.permute.xlu0 %2372 }
 0x27b   :  { %2753 = vmatpush3.msra.mxu1 %v3238_v33  ;;  %2754 = vmatprep.mubr.msk.f32.mxu1 %vm2985_vm2, %v2986_v56  ;;  %v1909_v34 = vsub.s32 0, %v1908_v27 }
 0x27c   :  { %2762 = vmatprep.subr.mxu1 %v2986_v56 }
 0x27d   :  { %v2939_v5 = vpop.eup %2938 }
 0x27e   :  { %2755 = vmatmul.mubr.f32.vlgmr.msra.gmra.mrb[14].mxu1 %v1982_v62  ;;  %v729_v6 = vmul.f32 0.6931472, %v2939_v5 }
 0x27f   :  { %2763 = vmatpush3.msra.mxu1 %v1994_v49  ;;  %2764 = vmatprep.mubr.msk.f32.mxu1 %vm2985_vm2, %v2986_v56 }
 0x280   :  { %v731_v8 = vmul.f32 %v730_v7, %v729_v6 }
 0x282   :  { %2765 = vmatmul.mubr.f32.vlgmr.msra.gmra.mrb[16].mxu1 %v1981_v61  ;;  %v732_v9 = vmul.f32 1.442695, %v731_v8  ;;  %v2363_v61 = vpop.permute.xlu1 %2362 }
 0x284   :  { %2940 = vpow2.f32 %v732_v9 }
 0x28e   :  { %v2941_v10 = vpop.eup %2940 }
 0x28f   :  { %v734_v11 = vadd.f32 1.0, %v2941_v10 }
 0x291   :  { %2942 = vrcp.f32 %v734_v11 }
 0x29b   :  { %v2943_v22 = vpop.eup %2942 }
 0x29c   :  { %v739_v28 = vrot.slane %v2943_v22, 6 }
 0x29e   :  { %v741_v35 = vmul.f32 %v739_v28, %v736_v26 }
 0x2a0   :  { %v1910_v40 = vrot.slane %v741_v35, %v1909_v34 }
 0x2a2   :  { %v1911_v63 = vmul.f32 %v1910_v40, %v1905_v42 }
 0x331   :  { %v1485_v12 = vpop.f32.mrb[4].mxu1  ;;  %v1733_v13 = vpop.f32.mrb[6].mxu0 }
 0x332   :  { %v2686_v39 = vpop.f32.mrb[5].mxu1  ;;  %v2719_v56 = vpop.f32.mrb[7].mxu0  ;;  %v1486_v15 = vadd.f32 %v1485_v12, %v1406_v14 }
 0x339   :  { %v1576_v16 = vpop.f32.mrb[6].mxu1  ;;  %v1891_v17 = vpop.f32.mrb[8].mxu0 }
 0x33a   :  { %v1577_v18 = vadd.f32 %v1576_v16, %v1486_v15  ;;  %v2697_v19 = vpop.f32.mrb[7].mxu1  ;;  %v2741_v20 = vpop.f32.mrb[9].mxu0 }
 0x33d   :  { %v2063_v24 = vpop.f32.mrb[10].mxu0 }
 0x33e   :  { %v2751_v25 = vpop.f32.mrb[11].mxu0 }
 0x341   :  { %v1656_v29 = vpop.f32.mrb[8].mxu1  ;;  %v2211_v30 = vpop.f32.mrb[12].mxu0 }
 0x342   :  { %v1657_v31 = vadd.f32 %v1656_v29, %v1577_v18  ;;  %v2708_v32 = vpop.f32.mrb[9].mxu1  ;;  %v2761_v33 = vpop.f32.mrb[13].mxu0 }
 0x344   :  { %v1734_v36 = vadd.f32 %v1733_v13, %v1657_v31 }
 0x345   :  { %v2357_v37 = vpop.f32.mrb[14].mxu0 }
 0x346   :  { %v2771_v38 = vpop.f32.mrb[15].mxu0 }
 0x349   :  { %v1816_v43 = vpop.f32.mrb[10].mxu1 }
 0x34a   :  { %v1817_v44 = vadd.f32 %v1816_v43, %v1734_v36  ;;  %v2730_v45 = vpop.f32.mrb[11].mxu1 }
 0x34c   :  { %v1892_v46 = vadd.f32 %v1891_v17, %v1817_v44 }
 0x34d   :  { %v1987_v48 = vpop.f32.mrb[12].mxu1 }
 0x34e   :  { %v1988_v49 = vadd.f32 %v1987_v48, %v1911_v63  ;;  %v2746_v50 = vpop.f32.mrb[13].mxu1  ;;  %v1899_v51 = vadd.f32 %v1897_v47, %v1892_v46 }
 0x350   :  { %v2064_v52 = vadd.f32 %v2063_v24, %v1988_v49  ;;  %v2368_v59 = vrot.slane %v1899_v51, %v1909_v34 }
 0x351   :  { %v2137_v53 = vpop.f32.mrb[14].mxu1 }
 0x352   :  { %v2138_v57 = vadd.f32 %v2137_v53, %v2064_v52  ;;  %v2756_v58 = vpop.f32.mrb[15].mxu1  ;;  %v2369_v1 = vmul.f32 %v2368_v59, %v2363_v61 }
 0x354   :  { %v2212_v60 = vadd.f32 %v2211_v30, %v2138_v57 }
 0x355   :  { %v2285_v54 = vpop.f32.mrb[16].mxu1 }
 0x356   :  { %v2286_v0 = vadd.f32 %v2285_v54, %v2212_v60  ;;  %v2766_v62 = vpop.f32.mrb[17].mxu1 }
 0x358   :  { %v2358_v2 = vadd.f32 %v2357_v37, %v2286_v0 }
 0x35a   :  { %v2370_v55 = vadd.f32 %v2369_v1, %v2358_v2 }
 0x35c   :  { %v2375_v4 = vadd.f32 %v2373_v3, %v2370_v55 }
 0x35e   :  { %2376 = vst [vmem:[#allocation4] sm:$0xff] %v2375_v4 }
 0x35f   :  { %2967 = shalt.err (!%p2964_p9)
}
 0x360   :  { %s2968_s23 = scalar_lea.hbm %s3313_s8, 128 }
 0x361   :  { %p2969_p10 = scmp.ne.s32.totalorder %s3313_s8, %s2968_s23  ;;  %p2972_p11 = scmp.lt.u32.totalorder %s2968_s23, %s3313_s8 }
 0x363   :  { %p2974_p12 = pnand %p2972_p11, %p2969_p10 }
 0x365   :  { %2977 = shalt.err (!%p2974_p12)
}
 0x366   :  { %2386 = dma.vmem_to_hbm [thread:$0]  %s2384_s19, 128, %s3313_s8, [#allocation5]  }
 0x367   :  { %2980 = dma.done.wait [#allocation5], 128  }
 0x368   :  { %2981 = vsyncadd [#allocation5], 4294967168 }
 0x369   :  { %2390 = vsyncpa [#allocation5], 1 }

</bundles_post_ra>
